<compile_context>
chip_gen: v7x
topology: tpu7x:2x2x1
jax: 0.10.0
libtpu: 0.0.40
codegen_flags: <defaults>
</compile_context>

<pallas_src>
import functools

import jax
import jax.numpy as jnp
from jax.experimental import pallas as pl
from jax.experimental.pallas import tpu as pltpu

D_IN = 768
D_HID = 256
D_OUT = 1


def _round_up(n, m):
    return ((n + m - 1) // m) * m


def mlp_kernel(x_ref, w1_ref, b1_ref, w2_ref, b2_ref, o_ref):
    # Layer 1 on the MXU: bf16 operands (cast in-kernel), f32 accumulation.
    x_bf = x_ref[...].astype(jnp.bfloat16)
    h = jnp.dot(x_bf, w1_ref[...], preferred_element_type=jnp.float32)
    h = jnp.maximum(h + b1_ref[...], 0.0)                 # (tb, 256) f32
    # Layer 2 (out_features == 1): VPU multiply + lane reduction instead of a
    # 1-column MXU matmul.  w2_ref is the pre-transposed (1, 256) row.
    z = jnp.sum(h * w2_ref[...], axis=-1, keepdims=True) + b2_ref[...]
    o_ref[...] = jax.nn.sigmoid(z).astype(o_ref.dtype)


@functools.partial(jax.jit, static_argnames=("tile_b",))
def net_forward(x, w1, b1, w2, b2, *, tile_b=512):
    """Forward pass of Net.

    x : (B, 768)   activations (f32 or bf16)
    w1: (768, 256) = fc.weight.T        b1: (1, 256) or (256,)
    w2: (256, 1)   = fc2.weight.T       b2: (1, 1)   or (1,)
    Returns (B, 1) float32.
    """
    B = x.shape[0]
    # Adaptive batch tile: big enough to fill the MXU and amortize grid-step
    # overhead, multiple of 8 (sublane), never larger than the rounded batch.
    tb = min(_round_up(tile_b, 8), _round_up(B, 8))
    B_pad = _round_up(B, tb)
    if B_pad != B:
        # Ragged batch: pad to a whole number of tiles; sliced off below.
        x = jnp.pad(x, ((0, B_pad - B), (0, 0)))

    w1_bf = w1.astype(jnp.bfloat16)                              # resident, 384 KB
    b1_row = jnp.asarray(b1, jnp.float32).reshape(1, D_HID)
    w2_row = jnp.asarray(w2, jnp.float32).reshape(1, D_HID)      # fc2 weight as a row
    b2_row = jnp.asarray(b2, jnp.float32).reshape(1, D_OUT)

    grid = (B_pad // tb,)
    const_idx = lambda i: (0, 0)          # weights/biases: same block every step
    single_buf = dict(pipeline_mode=pl.Buffered(1))   # constant blocks: no double-buffer

    out = pl.pallas_call(
        mlp_kernel,
        out_shape=jax.ShapeDtypeStruct((B_pad, D_OUT), jnp.float32),
        grid_spec=pltpu.PrefetchScalarGridSpec(
            num_scalar_prefetch=0,
            grid=grid,
            in_specs=[
                pl.BlockSpec((tb, D_IN), lambda i: (i, 0)),          # streamed x tile
                pl.BlockSpec((D_IN, D_HID), const_idx, **single_buf),  # W1 (bf16)
                pl.BlockSpec((1, D_HID), const_idx, **single_buf),     # b1
                pl.BlockSpec((1, D_HID), const_idx, **single_buf),     # W2 row
                pl.BlockSpec((1, D_OUT), const_idx, **single_buf),     # b2
            ],
            out_specs=pl.BlockSpec((tb, D_OUT), lambda i: (i, 0)),
        ),
        compiler_params=pltpu.CompilerParams(
            # Independent batch tiles -> shardable across both TCs on v7x.
            dimension_semantics=("parallel",)),
    )(x, w1_bf, b1_row, w2_row, b2_row)
    return out[:B]


def reference_forward(x, w1, b1, w2, b2):
    """Pure-JAX reference mirroring the kernel's bf16-operand / f32-accumulate math."""
    h = jnp.maximum(
        jnp.dot(x.astype(jnp.bfloat16), w1.astype(jnp.bfloat16),
                preferred_element_type=jnp.float32)
        + jnp.asarray(b1, jnp.float32).reshape(1, D_HID), 0.0)
    z = jnp.sum(h * jnp.asarray(w2, jnp.float32).reshape(1, D_HID),
                axis=-1, keepdims=True) + jnp.asarray(b2, jnp.float32).reshape(1, D_OUT)
    return jax.nn.sigmoid(z)


def init_params(key):
    # PyTorch default Linear init: U(-1/sqrt(fan_in), +1/sqrt(fan_in)).
    k1, k2, k3, k4 = jax.random.split(key, 4)
    bound1 = 1.0 / jnp.sqrt(D_IN)
    bound2 = 1.0 / jnp.sqrt(D_HID)
    w1 = jax.random.uniform(k1, (D_IN, D_HID), jnp.float32, -bound1, bound1)
    b1 = jax.random.uniform(k2, (1, D_HID), jnp.float32, -bound1, bound1)
    w2 = jax.random.uniform(k3, (D_HID, D_OUT), jnp.float32, -bound2, bound2)
    b2 = jax.random.uniform(k4, (1, D_OUT), jnp.float32, -bound2, bound2)
    return w1, b1, w2, b2


if __name__ == "__main__":
    key = jax.random.PRNGKey(0)
    kx, kp = jax.random.split(key)
    w1, b1, w2, b2 = init_params(kp)

    # Small test consistent with the module: batch of 8 rows of 768 features.
    B = 8
    x = jax.random.normal(kx, (B, D_IN), jnp.float32)
    out = jax.block_until_ready(net_forward(x, w1, b1, w2, b2))
    assert out.shape == (B, D_OUT)
    ref = reference_forward(x, w1, b1, w2, b2)
    assert jnp.allclose(out, ref, atol=1e-4, rtol=1e-4)
    # Loose sanity check against full-f32 math (bf16 operand rounding only).
    ref_f32 = jax.nn.sigmoid(jnp.maximum(x @ w1 + b1, 0.0) @ w2 + b2)
    assert jnp.allclose(out, ref_f32, atol=1e-2)

    # Exercise the ragged-batch / multi-tile path (200 rows -> padded to 256,
    # grid=(4,) with tile_b=64).
    B2 = 200
    x2 = jax.random.normal(kx, (B2, D_IN), jnp.float32)
    out2 = jax.block_until_ready(net_forward(x2, w1, b1, w2, b2, tile_b=64))
    assert out2.shape == (B2, D_OUT)
    ref2 = reference_forward(x2, w1, b1, w2, b2)
    assert jnp.allclose(out2, ref2, atol=1e-4, rtol=1e-4)

    print("KERNEL_OK")
</pallas_src>

<mosaic_0001>
module attributes {stable_mosaic.version = 11 : i64} {
  func.func @mlp_kernel(%arg0: i32, %arg1: memref<8x768xf32, #tpu.memory_space<vmem>>, %arg2: memref<768x256xbf16, #tpu.memory_space<vmem>>, %arg3: memref<1x256xf32, #tpu.memory_space<vmem>>, %arg4: memref<1x256xf32, #tpu.memory_space<vmem>>, %arg5: memref<1x1xf32, #tpu.memory_space<vmem>>, %arg6: memref<8x1xf32, #tpu.memory_space<vmem>>) attributes {dimension_semantics = [#tpu.dimension_semantics<parallel>], iteration_bounds = array<i64: 1>, scalar_prefetch = 0 : i64, scratch_operands = 0 : i64, tpu.core_type = #tpu.core_type<tc>, window_params = [{transform_indices = @transform_0, window_bounds = array<i64: 8, 768>}, {pipeline_mode = #tpu.pipeline_mode<synchronous>, transform_indices = @transform_1, window_bounds = array<i64: 768, 256>}, {pipeline_mode = #tpu.pipeline_mode<synchronous>, transform_indices = @transform_2, window_bounds = array<i64: 1, 256>}, {pipeline_mode = #tpu.pipeline_mode<synchronous>, transform_indices = @transform_3, window_bounds = array<i64: 1, 256>}, {pipeline_mode = #tpu.pipeline_mode<synchronous>, transform_indices = @transform_4, window_bounds = array<i64: 1, 1>}, {transform_indices = @transform_5, window_bounds = array<i64: 8, 1>}]} {
    %c0 = arith.constant 0 : index
    %c0_0 = arith.constant 0 : index
    %0 = vector.load %arg1[%c0, %c0_0] : memref<8x768xf32, #tpu.memory_space<vmem>>, vector<8x768xf32>
    %1 = arith.truncf %0 : vector<8x768xf32> to vector<8x768xbf16>
    %c0_1 = arith.constant 0 : index
    %c0_2 = arith.constant 0 : index
    %2 = vector.load %arg2[%c0_1, %c0_2] : memref<768x256xbf16, #tpu.memory_space<vmem>>, vector<768x256xbf16>
    %cst = arith.constant dense<0.000000e+00> : vector<8x256xf32>
    %3 = tpu.matmul %1, %2, %cst {dimension_numbers = #tpu.dot_dimension_numbers<[1], [0], [0], [1], [0, 0, 1, 1], [], []>} : vector<8x768xbf16>, vector<768x256xbf16>, vector<8x256xf32> -> vector<8x256xf32>
    %c0_3 = arith.constant 0 : index
    %c0_4 = arith.constant 0 : index
    %4 = vector.load %arg3[%c0_3, %c0_4] : memref<1x256xf32, #tpu.memory_space<vmem>>, vector<1x256xf32>
    %5 = vector.broadcast %4 : vector<1x256xf32> to vector<8x256xf32>
    %6 = arith.addf %3, %5 : vector<8x256xf32>
    %cst_5 = arith.constant 0.000000e+00 : f32
    %7 = vector.broadcast %cst_5 : f32 to vector<8x256xf32>
    %8 = arith.maximumf %6, %7 : vector<8x256xf32>
    %c0_6 = arith.constant 0 : index
    %c0_7 = arith.constant 0 : index
    %9 = vector.load %arg4[%c0_6, %c0_7] : memref<1x256xf32, #tpu.memory_space<vmem>>, vector<1x256xf32>
    %10 = vector.broadcast %9 : vector<1x256xf32> to vector<8x256xf32>
    %11 = arith.mulf %8, %10 : vector<8x256xf32>
    %cst_8 = arith.constant dense<0.000000e+00> : vector<8xf32>
    %12 = vector.multi_reduction <add>, %11, %cst_8 [1] : vector<8x256xf32> to vector<8xf32>
    %13 = vector.shape_cast %12 : vector<8xf32> to vector<8x1xf32>
    %c0_9 = arith.constant 0 : index
    %c0_10 = arith.constant 0 : index
    %14 = vector.load %arg5[%c0_9, %c0_10] : memref<1x1xf32, #tpu.memory_space<vmem>>, vector<1x1xf32>
    %15 = vector.broadcast %14 : vector<1x1xf32> to vector<8x1xf32>
    %16 = arith.addf %13, %15 : vector<8x1xf32>
    %17 = arith.negf %16 : vector<8x1xf32>
    %18 = math.exp %17 : vector<8x1xf32>
    %cst_11 = arith.constant 1.000000e+00 : f32
    %19 = vector.broadcast %cst_11 : f32 to vector<8x1xf32>
    %20 = arith.addf %19, %18 : vector<8x1xf32>
    %21 = arith.divf %19, %20 : vector<8x1xf32>
    %c0_12 = arith.constant 0 : index
    %c0_13 = arith.constant 0 : index
    %22 = vector.load %arg6[%c0_12, %c0_13] : memref<8x1xf32, #tpu.memory_space<vmem>>, vector<8x1xf32>
    tpu.vector_store %arg6[%c0_12, %c0_13], %21 {strides = array<i32>} : memref<8x1xf32, #tpu.memory_space<vmem>>, vector<8x1xf32>,
    return
  }
  func.func @transform_0(%arg0: i32) -> (i32, i32) {
    %c0_i32 = arith.constant 0 : i32
    %c0_i32_0 = arith.constant 0 : i32
    return %arg0, %c0_i32 : i32, i32
  }
  func.func @transform_1(%arg0: i32) -> (i32, i32) {
    %c0_i32 = arith.constant 0 : i32
    %c0_i32_0 = arith.constant 0 : i32
    %c0_i32_1 = arith.constant 0 : i32
    return %c0_i32, %c0_i32_0 : i32, i32
  }
  func.func @transform_2(%arg0: i32) -> (i32, i32) {
    %c0_i32 = arith.constant 0 : i32
    %c0_i32_0 = arith.constant 0 : i32
    %c0_i32_1 = arith.constant 0 : i32
    return %c0_i32, %c0_i32_0 : i32, i32
  }
  func.func @transform_3(%arg0: i32) -> (i32, i32) {
    %c0_i32 = arith.constant 0 : i32
    %c0_i32_0 = arith.constant 0 : i32
    %c0_i32_1 = arith.constant 0 : i32
    return %c0_i32, %c0_i32_0 : i32, i32
  }
  func.func @transform_4(%arg0: i32) -> (i32, i32) {
    %c0_i32 = arith.constant 0 : i32
    %c0_i32_0 = arith.constant 0 : i32
    %c0_i32_1 = arith.constant 0 : i32
    return %c0_i32, %c0_i32_0 : i32, i32
  }
  func.func @transform_5(%arg0: i32) -> (i32, i32) {
    %c0_i32 = arith.constant 0 : i32
    %c0_i32_0 = arith.constant 0 : i32
    return %arg0, %c0_i32 : i32, i32
  }
}

</mosaic_0001>

<bundles_post_ra>
// kernel: net_forward.1
= control target key start
LH: loop header
LB: loop body
LE: loop exit
PB: predicated region body
PF: predicated region fallthrough
CT: control target
= control target key end

     0   :  { %vm778_vm0 = vcmask 7168   ;;  %s1386_s1 = inlined_call_operand.vmem [shape: bf16[768,256], index: 1, kind: input, shape index: {}]   ;;  %s1387_s0 = inlined_call_operand.vmem [shape: f32[8,768], index: 0, kind: input, shape index: {}]   ;;  %s1388_s4 = inlined_call_operand.<no memory space> [shape: f32[1,1], index: 4, kind: input, shape index: {}]   ;;  %s1389_s2 = inlined_call_operand.vmem [shape: f32[1,256], index: 2, kind: input, shape index: {}]   ;;  %s1390_s3 = inlined_call_operand.vmem [shape: f32[1,256], index: 3, kind: input, shape index: {}]   ;;  %s1391_s5 = inlined_call_operand.vmem [shape: f32[8,1], index: 5, kind: output, shape index: {}]  }
   0x1   :  { %v890_v0 = vld [vmem:[%s1386_s1 + $0x104] ss:$8 sps:$4 sm:$0xff]   ;;  %v892_v1 = vld [vmem:[%s1386_s1 + $0x100] ss:$8 sps:$4 sm:$0xff]   ;;  %v893_v2 = vld [vmem:[%s1386_s1 + $0x114] ss:$8 sps:$4 sm:$0xff]  }
   0x2   :  { %663 = vmatprep.subr.bf16.mxu0 %v890_v0  ;;  %v895_v3 = vld [vmem:[%s1386_s1 + $0x110] ss:$8 sps:$4 sm:$0xff]   ;;  %v896_v4 = vld [vmem:[%s1386_s1 + $0x124] ss:$8 sps:$4 sm:$0xff]   ;;  %v898_v5 = vld [vmem:[%s1386_s1 + $0x120] ss:$8 sps:$4 sm:$0xff]  }
   0x3   :  { %664 = vmatpush1.bf16.msra.mxu0 %v892_v1  ;;  %v899_v6 = vld [vmem:[%s1386_s1 + $0x134] ss:$8 sps:$4 sm:$0xff]   ;;  %v901_v7 = vld [vmem:[%s1386_s1 + $0x130] ss:$8 sps:$4 sm:$0xff]   ;;  %v902_v8 = vld [vmem:[%s1386_s1 + $0x144] ss:$8 sps:$4 sm:$0xff]  }
   0x4   :  { %665 = vmatprep.subr.bf16.mxu0 %v893_v2  ;;  %v904_v9 = vld [vmem:[%s1386_s1 + $0x140] ss:$8 sps:$4 sm:$0xff]   ;;  %v905_v10 = vld [vmem:[%s1386_s1 + $0x154] ss:$8 sps:$4 sm:$0xff]   ;;  %v907_v11 = vld [vmem:[%s1386_s1 + $0x150] ss:$8 sps:$4 sm:$0xff]  }
   0x5   :  { %v908_v12 = vld [vmem:[%s1386_s1 + $0x164] ss:$8 sps:$4 sm:$0xff]   ;;  %v937_v14 = vld [vmem:[%s1386_s1] ss:$8 sps:$4 sm:$0xff]   ;;  %v911_v16 = vld [vmem:[%s1386_s1 + $0x174] ss:$8 sps:$4 sm:$0xff]  }
   0x6   :  { %v935_v13 = vld [vmem:[%s1386_s1 + $0x4] ss:$8 sps:$4 sm:$0xff]   ;;  %v910_v15 = vld [vmem:[%s1386_s1 + $0x160] ss:$8 sps:$4 sm:$0xff]   ;;  %v941_v17 = vld [vmem:[%s1386_s1 + $0x14] ss:$8 sps:$4 sm:$0xff]  }
   0x7   :  { %666 = vmatpush1.bf16.msra.mxu0 %v895_v3  ;;  %622 = vmatprep.subr.bf16.mxu1 %v935_v13  ;;  %v943_v18 = vld [vmem:[%s1386_s1 + $0x10] ss:$8 sps:$4 sm:$0xff]   ;;  %v947_v22 = vld [vmem:[%s1386_s1 + $0x24] ss:$8 sps:$4 sm:$0xff]   ;;  %v949_v23 = vld [vmem:[%s1386_s1 + $0x20] ss:$8 sps:$4 sm:$0xff]  }
   0x8   :  { %667 = vmatprep.subr.bf16.mxu0 %v896_v4  ;;  %623 = vmatpush1.bf16.msra.mxu1 %v937_v14  ;;  %v25_v19 = vld [vmem:[%s1387_s0 + $0x18] sm:$0xff]  ;;  %v914_v24 = vld [vmem:[%s1386_s1 + $0x184] ss:$8 sps:$4 sm:$0xff]   ;;  %v916_v26 = vld [vmem:[%s1386_s1 + $0x180] ss:$8 sps:$4 sm:$0xff]  }
   0x9   :  { %v913_v20 = vld [vmem:[%s1386_s1 + $0x170] ss:$8 sps:$4 sm:$0xff]   ;;  %624 = vmatprep.subr.bf16.mxu1 %v941_v17  ;;  %v31_v21 = vpack.c.bf16 %v25_v19, %v25_v19  ;;  %v953_v25 = vld [vmem:[%s1386_s1 + $0x34] ss:$8 sps:$4 sm:$0xff]   ;;  %v959_v29 = vld [vmem:[%s1386_s1 + $0x44] ss:$8 sps:$4 sm:$0xff]  }
   0xa   :  { %v955_v27 = vld [vmem:[%s1386_s1 + $0x30] ss:$8 sps:$4 sm:$0xff]   ;;  %v917_v28 = vld [vmem:[%s1386_s1 + $0x194] ss:$8 sps:$4 sm:$0xff]   ;;  %v961_v31 = vld [vmem:[%s1386_s1 + $0x40] ss:$8 sps:$4 sm:$0xff]  }
   0xb   :  { %668 = vmatpush1.bf16.msra.mxu0 %v898_v5  ;;  %695 = vmatprep.mubr.bf16.mxu0 %v31_v21  ;;  %v919_v30 = vld [vmem:[%s1386_s1 + $0x190] ss:$8 sps:$4 sm:$0xff]   ;;  %v920_v32 = vld [vmem:[%s1386_s1 + $0x1a4] ss:$8 sps:$4 sm:$0xff]   ;;  %v965_v33 = vld [vmem:[%s1386_s1 + $0x54] ss:$8 sps:$4 sm:$0xff]  }
   0xc   :  { %669 = vmatprep.subr.bf16.mxu0 %v899_v6  ;;  %625 = vmatpush1.bf16.msra.mxu1 %v943_v18  ;;  %v922_v34 = vld [vmem:[%s1386_s1 + $0x1a0] ss:$8 sps:$4 sm:$0xff]   ;;  %v967_v35 = vld [vmem:[%s1386_s1 + $0x50] ss:$8 sps:$4 sm:$0xff]   ;;  %v923_v36 = vld [vmem:[%s1386_s1 + $0x1b4] ss:$8 sps:$4 sm:$0xff]  }
   0xd   :  { %626 = vmatprep.subr.bf16.mxu1 %v947_v22  ;;  %v971_v37 = vld [vmem:[%s1386_s1 + $0x64] ss:$8 sps:$4 sm:$0xff]   ;;  %v925_v38 = vld [vmem:[%s1386_s1 + $0x1b0] ss:$8 sps:$4 sm:$0xff]   ;;  %v973_v39 = vld [vmem:[%s1386_s1 + $0x60] ss:$8 sps:$4 sm:$0xff]  }
   0xe   :  { %v926_v40 = vld [vmem:[%s1386_s1 + $0x1c4] ss:$8 sps:$4 sm:$0xff]   ;;  %v977_v41 = vld [vmem:[%s1386_s1 + $0x74] ss:$8 sps:$4 sm:$0xff]   ;;  %v928_v42 = vld [vmem:[%s1386_s1 + $0x1c0] ss:$8 sps:$4 sm:$0xff]  }
   0xf   :  { %670 = vmatpush1.bf16.msra.mxu0 %v901_v7  ;;  %v979_v43 = vld [vmem:[%s1386_s1 + $0x70] ss:$8 sps:$4 sm:$0xff]   ;;  %v929_v44 = vld [vmem:[%s1386_s1 + $0x1d4] ss:$8 sps:$4 sm:$0xff]   ;;  %v983_v45 = vld [vmem:[%s1386_s1 + $0x84] ss:$8 sps:$4 sm:$0xff]  }
  0x10   :  { %671 = vmatprep.subr.bf16.mxu0 %v902_v8  ;;  %627 = vmatpush1.bf16.msra.mxu1 %v949_v23  ;;  %v931_v46 = vld [vmem:[%s1386_s1 + $0x1d0] ss:$8 sps:$4 sm:$0xff]   ;;  %v985_v47 = vld [vmem:[%s1386_s1 + $0x80] ss:$8 sps:$4 sm:$0xff]   ;;  %v932_v48 = vld [vmem:[%s1386_s1 + $0x1e4] ss:$8 sps:$4 sm:$0xff]  }
  0x11   :  { %628 = vmatprep.subr.bf16.mxu1 %v953_v25  ;;  %v989_v49 = vld [vmem:[%s1386_s1 + $0x94] ss:$8 sps:$4 sm:$0xff]   ;;  %v934_v50 = vld [vmem:[%s1386_s1 + $0x1e0] ss:$8 sps:$4 sm:$0xff]   ;;  %v991_v51 = vld [vmem:[%s1386_s1 + $0x90] ss:$8 sps:$4 sm:$0xff]  }
  0x12   :  { %v938_v52 = vld [vmem:[%s1386_s1 + $0x1f4] ss:$8 sps:$4 sm:$0xff]   ;;  %v995_v53 = vld [vmem:[%s1386_s1 + $0xa4] ss:$8 sps:$4 sm:$0xff]   ;;  %v940_v54 = vld [vmem:[%s1386_s1 + $0x1f0] ss:$8 sps:$4 sm:$0xff]  }
  0x13   :  { %672 = vmatpush1.bf16.msra.mxu0 %v904_v9  ;;  %v24_v55 = vld [vmem:[%s1387_s0 + $0x10] sm:$0xff]  ;;  %v997_v56 = vld [vmem:[%s1386_s1 + $0xa0] ss:$8 sps:$4 sm:$0xff]   ;;  %v946_v57 = vld [vmem:[%s1386_s1 + $0x204] ss:$8 sps:$4 sm:$0xff]  }
  0x14   :  { %673 = vmatprep.subr.bf16.mxu0 %v905_v10  ;;  %629 = vmatpush1.bf16.msra.mxu1 %v955_v27  ;;  %v1001_v58 = vld [vmem:[%s1386_s1 + $0xb4] ss:$8 sps:$4 sm:$0xff]   ;;  %v944_v59 = vld [vmem:[%s1386_s1 + $0x200] ss:$8 sps:$4 sm:$0xff]   ;;  %v30_v60 = vpack.c.bf16 %v24_v55, %v24_v55  ;;  %v1003_v62 = vld [vmem:[%s1386_s1 + $0xb0] ss:$8 sps:$4 sm:$0xff]  }
  0x15   :  { %630 = vmatprep.subr.bf16.mxu1 %v959_v29  ;;  %v952_v61 = vld [vmem:[%s1386_s1 + $0x214] ss:$8 sps:$4 sm:$0xff]   ;;  %v23_v63 = vld [vmem:[%s1387_s0 + $0x8] sm:$0xff]  ;;  %v950_v4 = vld [vmem:[%s1386_s1 + $0x210] ss:$8 sps:$4 sm:$0xff]  }
  0x16   :  { %v1007_v0 = vld [vmem:[%s1386_s1 + $0xc4] ss:$8 sps:$4 sm:$0xff]   ;;  %v29_v1 = vpack.c.bf16 %v23_v63, %v23_v63  ;;  %v1009_v5 = vld [vmem:[%s1386_s1 + $0xc0] ss:$8 sps:$4 sm:$0xff]   ;;  %v1013_v7 = vld [vmem:[%s1386_s1 + $0xd4] ss:$8 sps:$4 sm:$0xff]  }
  0x17   :  { %674 = vmatpush1.bf16.msra.mxu0 %v907_v11  ;;  %v27_v2 = vld [vmem:[%s1387_s0 + $0x28] sm:$0xff]  ;;  %v1015_v9 = vld [vmem:[%s1386_s1 + $0xd0] ss:$8 sps:$4 sm:$0xff]   ;;  %v964_v10 = vld [vmem:[%s1386_s1 + $0x234] ss:$8 sps:$4 sm:$0xff]  }
  0x18   :  { %675 = vmatprep.subr.bf16.mxu0 %v908_v12  ;;  %631 = vmatpush1.bf16.msra.mxu1 %v961_v31  ;;  %v33_v3 = vpack.c.bf16 %v27_v2, %v27_v2  ;;  %v958_v6 = vld [vmem:[%s1386_s1 + $0x224] ss:$8 sps:$4 sm:$0xff]   ;;  %v956_v8 = vld [vmem:[%s1386_s1 + $0x220] ss:$8 sps:$4 sm:$0xff]   ;;  %v962_v12 = vld [vmem:[%s1386_s1 + $0x230] ss:$8 sps:$4 sm:$0xff]  }
  0x19   :  { %632 = vmatprep.subr.bf16.mxu1 %v965_v33  ;;  %654 = vmatprep.mubr.bf16.mxu1 %v29_v1  ;;  %v1019_v11 = vld [vmem:[%s1386_s1 + $0xe4] ss:$8 sps:$4 sm:$0xff]   ;;  %v1021_v13 = vld [vmem:[%s1386_s1 + $0xe0] ss:$8 sps:$4 sm:$0xff]   ;;  %v1027_v17 = vld [vmem:[%s1386_s1 + $0xf0] ss:$8 sps:$4 sm:$0xff]  }
  0x1a   :  { %v970_v14 = vld [vmem:[%s1386_s1 + $0x244] ss:$8 sps:$4 sm:$0xff]   ;;  %v976_v19 = vld [vmem:[%s1386_s1 + $0x254] ss:$8 sps:$4 sm:$0xff]   ;;  %v974_v21 = vld [vmem:[%s1386_s1 + $0x250] ss:$8 sps:$4 sm:$0xff]  }
  0x1b   :  { %676 = vmatpush1.bf16.msra.mxu0 %v910_v15  ;;  %v1025_v15 = vld [vmem:[%s1386_s1 + $0xf4] ss:$8 sps:$4 sm:$0xff]   ;;  %v22_v18 = vld [vmem:[%s1387_s0] sm:$0xff]  ;;  %v986_v25 = vld [vmem:[%s1386_s1 + $0x270] ss:$8 sps:$4 sm:$0xff]  }
  0x1c   :  { %677 = vmatprep.subr.bf16.mxu0 %v911_v16  ;;  %633 = vmatpush1.bf16.msra.mxu1 %v967_v35  ;;  %v968_v16 = vld [vmem:[%s1386_s1 + $0x240] ss:$8 sps:$4 sm:$0xff]   ;;  %v982_v22 = vld [vmem:[%s1386_s1 + $0x264] ss:$8 sps:$4 sm:$0xff]   ;;  %v998_v29 = vld [vmem:[%s1386_s1 + $0x290] ss:$8 sps:$4 sm:$0xff]  }
  0x1d   :  { %634 = vmatprep.subr.bf16.mxu1 %v971_v37  ;;  %v980_v23 = vld [vmem:[%s1386_s1 + $0x260] ss:$8 sps:$4 sm:$0xff]   ;;  %v1010_v33 = vld [vmem:[%s1386_s1 + $0x2b0] ss:$8 sps:$4 sm:$0xff]  }
  0x1e   :  { %v992_v27 = vld [vmem:[%s1386_s1 + $0x280] ss:$8 sps:$4 sm:$0xff]   ;;  %v1022_v37 = vld [vmem:[%s1386_s1 + $0x2d0] ss:$8 sps:$4 sm:$0xff]  }
  0x1f   :  { %678 = vmatpush1.bf16.msra.mxu0 %v913_v20  ;;  %v28_v20 = vpack.c.bf16 %v22_v18, %v22_v18  ;;  %v1004_v31 = vld [vmem:[%s1386_s1 + $0x2a0] ss:$8 sps:$4 sm:$0xff]  }
  0x20   :  { %679 = vmatprep.subr.bf16.mxu0 %v914_v24  ;;  %635 = vmatpush1.bf16.msra.mxu1 %v973_v39  ;;  %v988_v24 = vld [vmem:[%s1386_s1 + $0x274] ss:$8 sps:$4 sm:$0xff]   ;;  %v1016_v35 = vld [vmem:[%s1386_s1 + $0x2c0] ss:$8 sps:$4 sm:$0xff]  }
  0x21   :  { %636 = vmatprep.subr.bf16.mxu1 %v977_v41  ;;  %v1028_v39 = vld [vmem:[%s1386_s1 + $0x2e0] ss:$8 sps:$4 sm:$0xff]   ;;  %v1031_v41 = vld [vmem:[%s1386_s1 + $0x2f0] ss:$8 sps:$4 sm:$0xff]  }
  0x23   :  { %680 = vmatpush1.bf16.msra.mxu0 %v916_v26  ;;  %v994_v26 = vld [vmem:[%s1386_s1 + $0x284] ss:$8 sps:$4 sm:$0xff]  }
  0x24   :  { %681 = vmatprep.subr.bf16.mxu0 %v917_v28  ;;  %637 = vmatpush1.bf16.msra.mxu1 %v979_v43  ;;  %v1000_v28 = vld [vmem:[%s1386_s1 + $0x294] ss:$8 sps:$4 sm:$0xff]  }
  0x25   :  { %638 = vmatprep.subr.bf16.mxu1 %v983_v45 }
  0x27   :  { %682 = vmatpush1.bf16.msra.mxu0 %v919_v30  ;;  %v1006_v30 = vld [vmem:[%s1386_s1 + $0x2a4] ss:$8 sps:$4 sm:$0xff]  }
  0x28   :  { %683 = vmatprep.subr.bf16.mxu0 %v920_v32  ;;  %639 = vmatpush1.bf16.msra.mxu1 %v985_v47  ;;  %v1012_v32 = vld [vmem:[%s1386_s1 + $0x2b4] ss:$8 sps:$4 sm:$0xff]  }
  0x29   :  { %640 = vmatprep.subr.bf16.mxu1 %v989_v49  ;;  %v132_v49 = vlaneseq }
  0x2b   :  { %684 = vmatpush1.bf16.msra.mxu0 %v922_v34  ;;  %v1018_v34 = vld [vmem:[%s1386_s1 + $0x2c4] ss:$8 sps:$4 sm:$0xff]  }
  0x2c   :  { %685 = vmatprep.subr.bf16.mxu0 %v923_v36  ;;  %641 = vmatpush1.bf16.msra.mxu1 %v991_v51  ;;  %v1024_v36 = vld [vmem:[%s1386_s1 + $0x2d4] ss:$8 sps:$4 sm:$0xff]  }
  0x2d   :  { %642 = vmatprep.subr.bf16.mxu1 %v995_v53 }
  0x2f   :  { %686 = vmatpush1.bf16.msra.mxu0 %v925_v38  ;;  %v1030_v38 = vld [vmem:[%s1386_s1 + $0x2e4] ss:$8 sps:$4 sm:$0xff]  }
  0x30   :  { %687 = vmatprep.subr.bf16.mxu0 %v926_v40  ;;  %643 = vmatpush1.bf16.msra.mxu1 %v997_v56  ;;  %v1033_v40 = vld [vmem:[%s1386_s1 + $0x2f4] ss:$8 sps:$4 sm:$0xff]  }
  0x31   :  { %644 = vmatprep.subr.bf16.mxu1 %v1001_v58  ;;  %v747_v58 = vld [vmem:[%s1390_s3] sm:$0x3] }
  0x33   :  { %688 = vmatpush1.bf16.msra.mxu0 %v928_v42  ;;  %v26_v42 = vld [vmem:[%s1387_s0 + $0x20] sm:$0xff] }
  0x34   :  { %689 = vmatprep.subr.bf16.mxu0 %v929_v44  ;;  %645 = vmatpush1.bf16.msra.mxu1 %v1003_v62  ;;  %v32_v43 = vpack.c.bf16 %v26_v42, %v26_v42  ;;  %v10_v44 = vstv %s1388_s4 }
  0x35   :  { %646 = vmatprep.subr.bf16.mxu1 %v1007_v0  ;;  %11 = vst [vmem:[#allocation2] sm:$0x1] %v10_v44 }
  0x37   :  { %690 = vmatpush1.bf16.msra.mxu0 %v931_v46 }
  0x38   :  { %691 = vmatprep.subr.bf16.mxu0 %v932_v48  ;;  %647 = vmatpush1.bf16.msra.mxu1 %v1009_v5 }
  0x39   :  { %648 = vmatprep.subr.bf16.mxu1 %v1013_v7 }
  0x3b   :  { %692 = vmatpush1.bf16.msra.mxu0 %v934_v50  ;;  %v133_v50 = vshrl.u32 %v132_v49, 7 }
  0x3c   :  { %693 = vmatprep.subr.bf16.mxu0 %v938_v52  ;;  %649 = vmatpush1.bf16.msra.mxu1 %v1015_v9  ;;  %v130_v52 = vld [vmem:[%s1389_s2] sm:$0x3] }
  0x3d   :  { %650 = vmatprep.subr.bf16.mxu1 %v1019_v11  ;;  %v134_v51 = vsub.s32 0, %v133_v50  ;;  %v138_v53 = vsub.s32 1, %v133_v50 }
  0x3f   :  { %694 = vmatpush1.bf16.msra.mxu0 %v940_v54  ;;  %v135_v54 = vrot.slane %v130_v52, %v134_v51  ;;  %v139_v55 = vrot.slane %v130_v52, %v138_v53  ;;  %v752_v62 = vrot.slane %v747_v58, %v134_v51  ;;  %v756_v1 = vrot.slane %v747_v58, %v138_v53 }
  0x40   :  { %704 = vmatprep.subr.bf16.mxu0 %v946_v57  ;;  %651 = vmatpush1.bf16.msra.mxu1 %v1021_v13 }
  0x41   :  { %652 = vmatprep.subr.bf16.mxu1 %v1025_v15 }
  0x42   :  { %696 = vmatmul.mubr.bf16.vlgmr.msra.gmra.mrb[0].mxu0 %v30_v60 }
  0x43   :  { %705 = vmatpush1.bf16.msra.mxu0 %v944_v59  ;;  %736 = vmatprep.mubr.bf16.mxu0 %v33_v3 }
  0x44   :  { %706 = vmatprep.subr.bf16.mxu0 %v952_v61  ;;  %653 = vmatpush1.bf16.msra.mxu1 %v1027_v17 }
  0x47   :  { %707 = vmatpush1.bf16.msra.mxu0 %v950_v4  ;;  %655 = vmatmul.mubr.bf16.vlgmr.msra.gmra.mrb[0].mxu1 %v28_v20 }
  0x48   :  { %708 = vmatprep.subr.bf16.mxu0 %v958_v6 }
  0x4b   :  { %709 = vmatpush1.bf16.msra.mxu0 %v956_v8  ;;  %v880_v8 = vld [vmem:[#allocation2] ss:$0 sm:$0xff] }
  0x4c   :  { %710 = vmatprep.subr.bf16.mxu0 %v964_v10 }
  0x4f   :  { %711 = vmatpush1.bf16.msra.mxu0 %v962_v12 }
  0x50   :  { %712 = vmatprep.subr.bf16.mxu0 %v970_v14 }
  0x53   :  { %713 = vmatpush1.bf16.msra.mxu0 %v968_v16 }
  0x54   :  { %714 = vmatprep.subr.bf16.mxu0 %v976_v19 }
  0x57   :  { %715 = vmatpush1.bf16.msra.mxu0 %v974_v21 }
  0x58   :  { %716 = vmatprep.subr.bf16.mxu0 %v982_v22 }
  0x5b   :  { %717 = vmatpush1.bf16.msra.mxu0 %v980_v23 }
  0x5c   :  { %718 = vmatprep.subr.bf16.mxu0 %v988_v24 }
  0x5f   :  { %719 = vmatpush1.bf16.msra.mxu0 %v986_v25 }
  0x60   :  { %720 = vmatprep.subr.bf16.mxu0 %v994_v26 }
  0x63   :  { %721 = vmatpush1.bf16.msra.mxu0 %v992_v27 }
  0x64   :  { %722 = vmatprep.subr.bf16.mxu0 %v1000_v28 }
  0x67   :  { %723 = vmatpush1.bf16.msra.mxu0 %v998_v29 }
  0x68   :  { %724 = vmatprep.subr.bf16.mxu0 %v1006_v30 }
  0x6b   :  { %725 = vmatpush1.bf16.msra.mxu0 %v1004_v31 }
  0x6c   :  { %726 = vmatprep.subr.bf16.mxu0 %v1012_v32 }
  0x6f   :  { %727 = vmatpush1.bf16.msra.mxu0 %v1010_v33 }
  0x70   :  { %728 = vmatprep.subr.bf16.mxu0 %v1018_v34 }
  0x73   :  { %729 = vmatpush1.bf16.msra.mxu0 %v1016_v35 }
  0x74   :  { %730 = vmatprep.subr.bf16.mxu0 %v1024_v36 }
  0x77   :  { %731 = vmatpush1.bf16.msra.mxu0 %v1022_v37 }
  0x78   :  { %732 = vmatprep.subr.bf16.mxu0 %v1030_v38 }
  0x7b   :  { %733 = vmatpush1.bf16.msra.mxu0 %v1028_v39 }
  0x7c   :  { %734 = vmatprep.subr.bf16.mxu0 %v1033_v40 }
  0x7f   :  { %735 = vmatpush1.bf16.msra.mxu0 %v1031_v41 }
  0x82   :  { %737 = vmatmul.mubr.bf16.vlgmr.msra.gmra.mrb[0].mxu0 %v32_v43 }
 0x11a   :  { %v656_v45 = vpop.f32.mrb[0].mxu1 }
 0x11b   :  { %v658_v46 = vpop.f32.mrb[1].mxu1  ;;  %v657_v56 = vadd.f32 %v656_v45, %v135_v54 }
 0x11c   :  { %v660_v47 = vpop.f32.mrb[2].mxu1  ;;  %v659_v57 = vadd.f32 %v658_v46, %v139_v55 }
 0x11d   :  { %v661_v48 = vpop.f32.mrb[3].mxu1 }
 0x155   :  { %v738_v59 = vpop.f32.mrb[0].mxu0 }
 0x156   :  { %v883_v60 = vadd.f32 %v738_v59, %v657_v56  ;;  %v740_v61 = vpop.f32.mrb[1].mxu0 }
 0x157   :  { %v885_v63 = vadd.f32 %v740_v61, %v659_v57  ;;  %v742_v0 = vpop.f32.mrb[2].mxu0 }
 0x158   :  { %v745_v2 = vmax.f32 %v883_v60, 0.0  ;;  %v743_v3 = vpop.f32.mrb[3].mxu0 }
 0x159   :  { %v746_v4 = vmax.f32 %v885_v63, 0.0 }
 0x15a   :  { %v759_v5 = vmul.f32 %v752_v62, %v745_v2 }
 0x15b   :  { %v760_v6 = vmul.f32 %v756_v1, %v746_v4 }
 0x15d   :  { %v761_v7 = vadd.f32 %v760_v6, %v759_v5 }
 0x15f   :  { %762 = vadd.xlane.f32.xlu0 %v761_v7 }
 0x1ec   :  { %v763_v9 = vpop.xlane.xlu0 %762 }
 0x1ed   :  { %v771_v10 = vadd.f32 %v880_v8, %v763_v9 }
 0x1ef   :  { %v881_v11 = vmul.f32 -1.442695, %v771_v10 }
 0x1f1   :  { %1034 = vpow2.f32 %v881_v11 }
 0x1fb   :  { %v1035_v12 = vpop.eup %1034 }
 0x1fc   :  { %v775_v13 = vadd.f32 1.0, %v1035_v12 }
 0x1fe   :  { %1036 = vrcp.f32 %v775_v13 }
 0x208   :  { %v1037_v14 = vpop.eup %1036 }
 0x209   :  { %779 = vst.msk [vmem:[%s1391_s5] sm:$0xff] %vm778_vm0, %v1037_v14 }

</bundles_post_ra>
